<compile_context>
chip_gen: v6e
topology: v6e:2x2x1
jax: 0.10.0
libtpu: 0.0.40
codegen_flags: <defaults>
</compile_context>

<pallas_src>
import jax
import jax.numpy as jnp
from jax.experimental import pallas as pl
from jax.experimental.pallas import tpu as pltpu

input_dim = 6        # state_dim + action_dim
output_dim = 2
state_dim = 4
action_dim = 2


def _env_model_kernel(s_ref, a_ref, ws_ref, wa_ref, b_ref, o_ref):
    # s_ref:  (state_dim, TB)  VMEM      a_ref: (action_dim, TB) VMEM
    # ws_ref: (state_dim, output_dim)  SMEM
    # wa_ref: (action_dim, output_dim) SMEM
    # b_ref:  (output_dim,)            SMEM
    # o_ref:  (output_dim, TB) VMEM
    sd = s_ref.shape[0]
    ad = a_ref.shape[0]
    od = o_ref.shape[0]

    s = s_ref[...].astype(jnp.float32)   # (sd, TB)
    a = a_ref[...].astype(jnp.float32)   # (ad, TB)

    # out[j, :] = sum_k ws[k, j] * s[k, :] + sum_k wa[k, j] * a[k, :] + b[j]
    # -> 12 scalar-broadcast FMAs per output row pair on the VPU.
    for j in range(od):
        acc = s[0:1, :] * ws_ref[0, j] + b_ref[j]
        for k in range(1, sd):
            acc = acc + s[k:k + 1, :] * ws_ref[k, j]
        for k in range(ad):
            acc = acc + a[k:k + 1, :] * wa_ref[k, j]
        o_ref[j:j + 1, :] = acc.astype(o_ref.dtype)


def _env_model_pallas_t(state_t, action_t, w_s, w_a, b, *, tile_b):
    """Core kernel on (feature, batch)-major arrays. Returns out_T (output_dim, B)."""
    sd, B = state_t.shape
    ad = action_t.shape[0]
    od = w_s.shape[1]

    # Full batch in one tile when it fits (always layout-legal: last dim == array
    # dim); otherwise tile_b lanes per step (multiple of 128).
    tb = B if B <= tile_b else tile_b
    grid = (pl.cdiv(B, tb),)

    itemsize = jnp.dtype(state_t.dtype).itemsize
    cost = pl.CostEstimate(
        flops=2 * B * (sd + ad) * od,
        transcendentals=0,
        bytes_accessed=(B * (sd + ad + od) + (sd + ad) * od + od) * itemsize,
    )

    return pl.pallas_call(
        _env_model_kernel,
        out_shape=jax.ShapeDtypeStruct((od, B), state_t.dtype),
        grid=grid,
        in_specs=[
            pl.BlockSpec((sd, tb), lambda i: (0, i)),
            pl.BlockSpec((ad, tb), lambda i: (0, i)),
            pl.BlockSpec(memory_space=pltpu.MemorySpace.SMEM),
            pl.BlockSpec(memory_space=pltpu.MemorySpace.SMEM),
            pl.BlockSpec(memory_space=pltpu.MemorySpace.SMEM),
        ],
        out_specs=pl.BlockSpec((od, tb), lambda i: (0, i)),
        compiler_params=pltpu.CompilerParams(
            dimension_semantics=("parallel",),
        ),
        cost_estimate=cost,
    )(state_t, action_t, w_s, w_a, b)


def environment_model_forward(state, action, w_t, b, *,
                              tile_b=65536, min_pallas_rows=4096):
    """Forward of EnvironmentModel: fc(cat([state, action], dim=1)).

    state : (B, state_dim)   action: (B, action_dim)
    w_t   : (input_dim, output_dim)  -- PyTorch fc.weight (output_dim, input_dim), transposed
    b     : (output_dim,)
    Returns (B, output_dim).
    """
    B, sd = state.shape
    ad = action.shape[1]
    assert sd + ad == w_t.shape[0]

    # Split the weight so cat(s, a) @ W_T == s @ W_T[:sd] + a @ W_T[sd:].
    w_s = w_t[:sd]
    w_a = w_t[sd:]

    if B < min_pallas_rows:
        # Small-B fast path: pallas_call launch + one grid step would cost more
        # than the entire op; let XLA fuse this into the surrounding graph.
        return state @ w_s + action @ w_a + b

    # TODO(synk): ideally the upstream producer emits the (feature, batch)-major
    # layout directly so these two XLA transposes (and their HBM round trip)
    # disappear; use _env_model_pallas_t in that case.
    out_t = _env_model_pallas_t(state.T, action.T, w_s, w_a, b, tile_b=tile_b)
    return out_t.T


def init_params(key):
    # Mirrors nn.Linear default init: U(-1/sqrt(fan_in), 1/sqrt(fan_in)).
    k_w, k_b = jax.random.split(key)
    bound = 1.0 / jnp.sqrt(jnp.float32(input_dim))
    # PyTorch weight is (output_dim, input_dim); store the transpose for the kernel.
    w = jax.random.uniform(k_w, (output_dim, input_dim), jnp.float32, -bound, bound)
    b = jax.random.uniform(k_b, (output_dim,), jnp.float32, -bound, bound)
    return w.T, b


if __name__ == "__main__":
    key = jax.random.PRNGKey(0)
    k_params, k_s, k_a = jax.random.split(key, 3)
    w_t, b = init_params(k_params)

    # --- Small batch (module-sized example): force the Pallas path so the kernel
    # itself is exercised, then also check the small-B XLA fast path.
    batch = 2
    state = jax.random.normal(k_s, (batch, state_dim), jnp.float32)
    action = jax.random.normal(k_a, (batch, action_dim), jnp.float32)

    out = environment_model_forward(state, action, w_t, b, min_pallas_rows=0)
    jax.block_until_ready(out)

    ref = jnp.concatenate([state, action], axis=1) @ w_t + b
    assert out.shape == (batch, output_dim)
    assert jnp.allclose(out, ref, atol=1e-5, rtol=1e-5)

    out_fast = environment_model_forward(state, action, w_t, b)  # XLA fast path
    jax.block_until_ready(out_fast)
    assert jnp.allclose(out_fast, ref, atol=1e-5, rtol=1e-5)

    # --- Multi-tile path with a partial last block (B=1000, tb=256 -> 4 tiles).
    big_b = 1000
    k_s2, k_a2 = jax.random.split(jax.random.PRNGKey(1))
    state2 = jax.random.normal(k_s2, (big_b, state_dim), jnp.float32)
    action2 = jax.random.normal(k_a2, (big_b, action_dim), jnp.float32)
    out2 = environment_model_forward(state2, action2, w_t, b,
                                     tile_b=256, min_pallas_rows=0)
    jax.block_until_ready(out2)
    ref2 = jnp.concatenate([state2, action2], axis=1) @ w_t + b
    assert out2.shape == (big_b, output_dim)
    assert jnp.allclose(out2, ref2, atol=1e-5, rtol=1e-5)

    print("KERNEL_OK")
</pallas_src>

<mosaic_0001>
module attributes {stable_mosaic.version = 11 : i64} {
  func.func @_env_model_kernel(%arg0: i32, %arg1: memref<4x2xf32, #tpu.memory_space<vmem>>, %arg2: memref<2x2xf32, #tpu.memory_space<vmem>>, %arg3: memref<4x2xf32, #tpu.memory_space<smem>>, %arg4: memref<2x2xf32, #tpu.memory_space<smem>>, %arg5: memref<2xf32, #tpu.memory_space<smem>>, %arg6: memref<2x2xf32, #tpu.memory_space<vmem>>) attributes {dimension_semantics = [#tpu.dimension_semantics<parallel>], iteration_bounds = array<i64: 1>, scalar_prefetch = 0 : i64, scratch_operands = 0 : i64, tpu.core_type = #tpu.core_type<tc>, window_params = [{transform_indices = @transform_0, window_bounds = array<i64: 4, 2>}, {transform_indices = @transform_1, window_bounds = array<i64: 2, 2>}, {transform_indices = @transform_2, window_bounds = array<i64: 4, 2>}, {transform_indices = @transform_3, window_bounds = array<i64: 2, 2>}, {transform_indices = @transform_4, window_bounds = array<i64: 2>}, {transform_indices = @transform_5, window_bounds = array<i64: 2, 2>}]} {
    %c0 = arith.constant 0 : index
    %c0_0 = arith.constant 0 : index
    %0 = vector.load %arg1[%c0, %c0_0] : memref<4x2xf32, #tpu.memory_space<vmem>>, vector<4x2xf32>
    %c0_1 = arith.constant 0 : index
    %c0_2 = arith.constant 0 : index
    %1 = vector.load %arg2[%c0_1, %c0_2] : memref<2x2xf32, #tpu.memory_space<vmem>>, vector<2x2xf32>
    %2 = vector.extract_strided_slice %0 {offsets = [0, 0], sizes = [1, 2], strides = [1, 1]} : vector<4x2xf32> to vector<1x2xf32>
    %c0_3 = arith.constant 0 : index
    %c0_4 = arith.constant 0 : index
    %3 = memref.load %arg3[%c0_3, %c0_4] : memref<4x2xf32, #tpu.memory_space<smem>>
    %4 = vector.broadcast %3 : f32 to vector<1x2xf32>
    %5 = arith.mulf %2, %4 : vector<1x2xf32>
    %c0_5 = arith.constant 0 : index
    %6 = memref.load %arg5[%c0_5] : memref<2xf32, #tpu.memory_space<smem>>
    %7 = vector.broadcast %6 : f32 to vector<1x2xf32>
    %8 = arith.addf %5, %7 : vector<1x2xf32>
    %9 = vector.extract_strided_slice %0 {offsets = [1, 0], sizes = [1, 2], strides = [1, 1]} : vector<4x2xf32> to vector<1x2xf32>
    %c1 = arith.constant 1 : index
    %c0_6 = arith.constant 0 : index
    %10 = memref.load %arg3[%c1, %c0_6] : memref<4x2xf32, #tpu.memory_space<smem>>
    %11 = vector.broadcast %10 : f32 to vector<1x2xf32>
    %12 = arith.mulf %9, %11 : vector<1x2xf32>
    %13 = arith.addf %8, %12 : vector<1x2xf32>
    %14 = vector.extract_strided_slice %0 {offsets = [2, 0], sizes = [1, 2], strides = [1, 1]} : vector<4x2xf32> to vector<1x2xf32>
    %c2 = arith.constant 2 : index
    %c0_7 = arith.constant 0 : index
    %15 = memref.load %arg3[%c2, %c0_7] : memref<4x2xf32, #tpu.memory_space<smem>>
    %16 = vector.broadcast %15 : f32 to vector<1x2xf32>
    %17 = arith.mulf %14, %16 : vector<1x2xf32>
    %18 = arith.addf %13, %17 : vector<1x2xf32>
    %19 = vector.extract_strided_slice %0 {offsets = [3, 0], sizes = [1, 2], strides = [1, 1]} : vector<4x2xf32> to vector<1x2xf32>
    %c3 = arith.constant 3 : index
    %c0_8 = arith.constant 0 : index
    %20 = memref.load %arg3[%c3, %c0_8] : memref<4x2xf32, #tpu.memory_space<smem>>
    %21 = vector.broadcast %20 : f32 to vector<1x2xf32>
    %22 = arith.mulf %19, %21 : vector<1x2xf32>
    %23 = arith.addf %18, %22 : vector<1x2xf32>
    %24 = vector.extract_strided_slice %1 {offsets = [0, 0], sizes = [1, 2], strides = [1, 1]} : vector<2x2xf32> to vector<1x2xf32>
    %c0_9 = arith.constant 0 : index
    %c0_10 = arith.constant 0 : index
    %25 = memref.load %arg4[%c0_9, %c0_10] : memref<2x2xf32, #tpu.memory_space<smem>>
    %26 = vector.broadcast %25 : f32 to vector<1x2xf32>
    %27 = arith.mulf %24, %26 : vector<1x2xf32>
    %28 = arith.addf %23, %27 : vector<1x2xf32>
    %29 = vector.extract_strided_slice %1 {offsets = [1, 0], sizes = [1, 2], strides = [1, 1]} : vector<2x2xf32> to vector<1x2xf32>
    %c1_11 = arith.constant 1 : index
    %c0_12 = arith.constant 0 : index
    %30 = memref.load %arg4[%c1_11, %c0_12] : memref<2x2xf32, #tpu.memory_space<smem>>
    %31 = vector.broadcast %30 : f32 to vector<1x2xf32>
    %32 = arith.mulf %29, %31 : vector<1x2xf32>
    %33 = arith.addf %28, %32 : vector<1x2xf32>
    %c0_13 = arith.constant 0 : index
    %c0_14 = arith.constant 0 : index
    %34 = vector.load %arg6[%c0_13, %c0_14] : memref<2x2xf32, #tpu.memory_space<vmem>>, vector<1x2xf32>
    tpu.vector_store %arg6[%c0_13, %c0_14], %33 {strides = array<i32>} : memref<2x2xf32, #tpu.memory_space<vmem>>, vector<1x2xf32>,
    %35 = vector.extract_strided_slice %0 {offsets = [0, 0], sizes = [1, 2], strides = [1, 1]} : vector<4x2xf32> to vector<1x2xf32>
    %c0_15 = arith.constant 0 : index
    %c1_16 = arith.constant 1 : index
    %36 = memref.load %arg3[%c0_15, %c1_16] : memref<4x2xf32, #tpu.memory_space<smem>>
    %37 = vector.broadcast %36 : f32 to vector<1x2xf32>
    %38 = arith.mulf %35, %37 : vector<1x2xf32>
    %c1_17 = arith.constant 1 : index
    %39 = memref.load %arg5[%c1_17] : memref<2xf32, #tpu.memory_space<smem>>
    %40 = vector.broadcast %39 : f32 to vector<1x2xf32>
    %41 = arith.addf %38, %40 : vector<1x2xf32>
    %42 = vector.extract_strided_slice %0 {offsets = [1, 0], sizes = [1, 2], strides = [1, 1]} : vector<4x2xf32> to vector<1x2xf32>
    %c1_18 = arith.constant 1 : index
    %c1_19 = arith.constant 1 : index
    %43 = memref.load %arg3[%c1_18, %c1_19] : memref<4x2xf32, #tpu.memory_space<smem>>
    %44 = vector.broadcast %43 : f32 to vector<1x2xf32>
    %45 = arith.mulf %42, %44 : vector<1x2xf32>
    %46 = arith.addf %41, %45 : vector<1x2xf32>
    %47 = vector.extract_strided_slice %0 {offsets = [2, 0], sizes = [1, 2], strides = [1, 1]} : vector<4x2xf32> to vector<1x2xf32>
    %c2_20 = arith.constant 2 : index
    %c1_21 = arith.constant 1 : index
    %48 = memref.load %arg3[%c2_20, %c1_21] : memref<4x2xf32, #tpu.memory_space<smem>>
    %49 = vector.broadcast %48 : f32 to vector<1x2xf32>
    %50 = arith.mulf %47, %49 : vector<1x2xf32>
    %51 = arith.addf %46, %50 : vector<1x2xf32>
    %52 = vector.extract_strided_slice %0 {offsets = [3, 0], sizes = [1, 2], strides = [1, 1]} : vector<4x2xf32> to vector<1x2xf32>
    %c3_22 = arith.constant 3 : index
    %c1_23 = arith.constant 1 : index
    %53 = memref.load %arg3[%c3_22, %c1_23] : memref<4x2xf32, #tpu.memory_space<smem>>
    %54 = vector.broadcast %53 : f32 to vector<1x2xf32>
    %55 = arith.mulf %52, %54 : vector<1x2xf32>
    %56 = arith.addf %51, %55 : vector<1x2xf32>
    %57 = vector.extract_strided_slice %1 {offsets = [0, 0], sizes = [1, 2], strides = [1, 1]} : vector<2x2xf32> to vector<1x2xf32>
    %c0_24 = arith.constant 0 : index
    %c1_25 = arith.constant 1 : index
    %58 = memref.load %arg4[%c0_24, %c1_25] : memref<2x2xf32, #tpu.memory_space<smem>>
    %59 = vector.broadcast %58 : f32 to vector<1x2xf32>
    %60 = arith.mulf %57, %59 : vector<1x2xf32>
    %61 = arith.addf %56, %60 : vector<1x2xf32>
    %62 = vector.extract_strided_slice %1 {offsets = [1, 0], sizes = [1, 2], strides = [1, 1]} : vector<2x2xf32> to vector<1x2xf32>
    %c1_26 = arith.constant 1 : index
    %c1_27 = arith.constant 1 : index
    %63 = memref.load %arg4[%c1_26, %c1_27] : memref<2x2xf32, #tpu.memory_space<smem>>
    %64 = vector.broadcast %63 : f32 to vector<1x2xf32>
    %65 = arith.mulf %62, %64 : vector<1x2xf32>
    %66 = arith.addf %61, %65 : vector<1x2xf32>
    %c1_28 = arith.constant 1 : index
    %c0_29 = arith.constant 0 : index
    %67 = vector.load %arg6[%c1_28, %c0_29] : memref<2x2xf32, #tpu.memory_space<vmem>>, vector<1x2xf32>
    tpu.vector_store %arg6[%c1_28, %c0_29], %66 {strides = array<i32>} : memref<2x2xf32, #tpu.memory_space<vmem>>, vector<1x2xf32>,
    return
  }
  func.func @transform_0(%arg0: i32) -> (i32, i32) {
    %c0_i32 = arith.constant 0 : i32
    %c0_i32_0 = arith.constant 0 : i32
    return %c0_i32, %arg0 : i32, i32
  }
  func.func @transform_1(%arg0: i32) -> (i32, i32) {
    %c0_i32 = arith.constant 0 : i32
    %c0_i32_0 = arith.constant 0 : i32
    return %c0_i32, %arg0 : i32, i32
  }
  func.func @transform_2(%arg0: i32) -> (i32, i32) {
    %c0_i32 = arith.constant 0 : i32
    %c0_i32_0 = arith.constant 0 : i32
    %c0_i32_1 = arith.constant 0 : i32
    return %c0_i32, %c0_i32_0 : i32, i32
  }
  func.func @transform_3(%arg0: i32) -> (i32, i32) {
    %c0_i32 = arith.constant 0 : i32
    %c0_i32_0 = arith.constant 0 : i32
    %c0_i32_1 = arith.constant 0 : i32
    return %c0_i32, %c0_i32_0 : i32, i32
  }
  func.func @transform_4(%arg0: i32) -> i32 {
    %c0_i32 = arith.constant 0 : i32
    %c0_i32_0 = arith.constant 0 : i32
    return %c0_i32 : i32
  }
  func.func @transform_5(%arg0: i32) -> (i32, i32) {
    %c0_i32 = arith.constant 0 : i32
    %c0_i32_0 = arith.constant 0 : i32
    return %c0_i32, %arg0 : i32, i32
  }
}

</mosaic_0001>

<bundles_post_ra>
// kernel: tpu_custom_call.1
= control target key start
LH: loop header
LB: loop body
LE: loop exit
PB: predicated region body
PF: predicated region fallthrough
CT: control target
= control target key end

     0   :  { %10 = vsyncpa [#allocation4], 0  ;;  %s286_s0 = inlined_call_operand.vmem [shape: f32[4,2], index: 0, kind: input, shape index: {}]   ;;  %s287_s1 = inlined_call_operand.vmem [shape: f32[2,2], index: 1, kind: input, shape index: {}]   ;;  %s288_s2 = inlined_call_operand.vmem [shape: f32[4,2], index: 2, kind: input, shape index: {}]   ;;  %s289_s3 = inlined_call_operand.vmem [shape: f32[2,2], index: 3, kind: input, shape index: {}]   ;;  %s290_s4 = inlined_call_operand.vmem [shape: f32[2], index: 4, kind: input, shape index: {}]   ;;  %s291_s5 = inlined_call_operand.hbm [shape: f32[2,2], index: 5, kind: output, shape index: {}]  }
   0x1   :  { %11 = vsyncpa [#allocation6], 0  ;;  %s33_s20 = sshll.u32 %s289_s3, 4  ;;  %s34_s20 = int_to_ptr.vmem [resolvable:$true] %s33_s20 }
   0x2   :  { %12 = vsyncpa [#allocation3], 0  ;;  %s23_s23 = sshll.u32 %s288_s2, 4  ;;  %s169_s24 = scalar_lea.vmem %s34_s20, 32  ;;  %s24_s23 = int_to_ptr.vmem [resolvable:$true] %s23_s23 }
   0x3   :  { %p170_p0 = scmp.ne.s32.totalorder %s34_s20, %s169_s24  ;;  %p174_p1 = scmp.lt.s32.totalorder %s34_s20, %s34_s20 }
   0x4   :  { %p175_p2 = scmp.lt.s32.totalorder %s169_s24, %s169_s24 }
   0x6   :  { %p176_p3 = por %p175_p2, %p174_p1 }
   0x8   :  { %p177_p4 = pnand %p176_p3, %p170_p0 }
   0xa   :  { %180 = shalt.err (!%p177_p4)
}
   0xb   :  { %s231_s25 = smov [#allocation5]   ;;  %s181_s26 = scalar_lea.vmem %s24_s23, 64 }
   0xc   :  { %36 = dma.vmem_to_smem %s34_s20, 32, %s231_s25, [#allocation6]  }
   0xd   :  { %p182_p5 = scmp.ne.s32.totalorder %s24_s23, %s181_s26  ;;  %p186_p6 = scmp.lt.s32.totalorder %s24_s23, %s24_s23 }
   0xe   :  { %p187_p7 = scmp.lt.s32.totalorder %s181_s26, %s181_s26 }
  0x10   :  { %p188_p8 = por %p187_p7, %p186_p6 }
  0x12   :  { %p189_p9 = pnand %p188_p8, %p182_p5 }
  0x14   :  { %192 = shalt.err (!%p189_p9)
}
  0x15   :  { %s232_s3 = smov [#allocation2]   ;;  %s43_s28 = sshll.u32 %s290_s4, 4  ;;  %s44_s28 = int_to_ptr.vmem [resolvable:$true] %s43_s28 }
  0x16   :  { %26 = dma.vmem_to_smem %s24_s23, 64, %s232_s3, [#allocation4]  }
  0x17   :  { %s193_s29 = scalar_lea.vmem %s44_s28, 16  ;;  %p198_p11 = scmp.lt.s32.totalorder %s44_s28, %s44_s28 }
  0x18   :  { %p194_p10 = scmp.ne.s32.totalorder %s44_s28, %s193_s29  ;;  %p199_p12 = scmp.lt.s32.totalorder %s193_s29, %s193_s29 }
  0x1a   :  { %p200_p13 = por %p199_p12, %p198_p11 }
  0x1c   :  { %p201_p0 = pnand %p200_p13, %p194_p10 }
  0x1e   :  { %204 = shalt.err (!%p201_p0)
}
  0x1f   :  { %s233_s30 = smov [#allocation7]  }
  0x20   :  { %46 = dma.vmem_to_smem %s44_s28, 16, %s233_s30, [#allocation6]  }
  0x21   :  { %225 = dma.done.wait [#allocation4], 64  }
  0x22   :  { %226 = vsyncadd [#allocation4], 4294967232 }
  0x23   :  { %227 = dma.done.wait [#allocation6], 48  }
  0x24   :  { %228 = vsyncadd [#allocation6], 4294967248 }
  0x25   :  { %56 = sfence }
  0x26   :  { %s59_s6 = sld [smem:[#allocation2]]  ;;  %v57_v0 = vld [vmem:[%s286_s0] sm:$0xf]  ;;  %vm97_vm0 = vcmask 8192  }
  0x27   :  { %s62_s7 = sld [smem:[#allocation7]]  ;;  %v58_v8 = vld [vmem:[%s287_s1] sm:$0x3]  ;;  %s234_s1 = smov [#allocation8]  }
  0x28   :  { %s154_s8 = sld [smem:[#allocation2 + $0x80]]  ;;  %s144_s22 = sshll.u32 %s234_s1, 4  ;;  %s145_s22 = int_to_ptr.vmem [resolvable:$true] %s144_s22 }
  0x29   :  { %s155_s9 = sld [smem:[#allocation2 + $0x100]]  ;;  %s205_s23 = scalar_lea.vmem %s145_s22, 32 }
  0x2a   :  { %s156_s11 = sld [smem:[#allocation2 + $0x180]]  ;;  %p206_p1 = scmp.ne.s32.totalorder %s145_s22, %s205_s23 }
  0x2b   :  { %s277_s12 = sld [smem:[#allocation5]]  ;;  %p210_p2 = scmp.lt.s32.totalorder %s145_s22, %s145_s22 }
  0x2c   :  { %v60_v1 = vstv %s59_s6  ;;  %s157_s13 = sld [smem:[#allocation5 + $0x80]]  ;;  %p211_p3 = scmp.lt.s32.totalorder %s205_s23, %s205_s23 }
  0x2d   :  { %v61_v2 = vmul.f32 %v60_v1, %v57_v0  ;;  %v63_v3 = vstv %s62_s7  ;;  %s158_s14 = sld [smem:[#allocation2 + $0x1]] }
  0x2e   :  { %v66_v4 = vstv %s154_s8  ;;  %s159_s15 = sld [smem:[#allocation7 + $0x1]]  ;;  %p212_p4 = por %p211_p3, %p210_p2 }
  0x2f   :  { %v64_v5 = vadd.f32 %v63_v3, %v61_v2  ;;  %v67_v6 = vmul.f32 %v66_v4, %v57_v0  ;;  %v73_v7 = vstv %s155_s9  ;;  %s160_s16 = sld [smem:[#allocation2 + $0x81]] }
  0x30   :  { %v74_v9 = vmul.f32 %v73_v7, %v57_v0  ;;  %v80_v10 = vstv %s156_s11  ;;  %s161_s0 = sld [smem:[#allocation2 + $0x101]]  ;;  %p213_p5 = pnand %p212_p4, %p206_p1 }
  0x31   :  { %v69_v11 = vrot.slane %v67_v6, 1  ;;  %v81_v12 = vmul.f32 %v80_v10, %v57_v0  ;;  %s162_s19 = sld [smem:[#allocation2 + $0x181]]  ;;  %v87_v14 = vstv %s277_s12 }
  0x32   :  { %v76_v13 = vrot.slane %v74_v9, 2  ;;  %v91_v15 = vstv %s157_s13  ;;  %s163_s20 = sld [smem:[#allocation5 + $0x1]]  ;;  %v88_v23 = vmul.f32 %v87_v14, %v58_v8 }
  0x33   :  { %v71_v16 = vadd.f32 %v69_v11, %v64_v5  ;;  %v83_v17 = vrot.slane %v81_v12, 3  ;;  %v92_v18 = vmul.f32 %v91_v15, %v58_v8  ;;  %v100_v19 = vstv %s158_s14  ;;  %s164_s21 = sld [smem:[#allocation5 + $0x81]] }
  0x34   :  { %v101_v20 = vmul.f32 %v100_v19, %v57_v0  ;;  %v103_v21 = vstv %s159_s15 }
  0x35   :  { %v78_v22 = vadd.f32 %v76_v13, %v71_v16  ;;  %v106_v24 = vstv %s160_s16  ;;  %v94_v29 = vrot.slane %v92_v18, 1 }
  0x36   :  { %v104_v25 = vadd.f32 %v103_v21, %v101_v20  ;;  %v107_v26 = vmul.f32 %v106_v24, %v57_v0  ;;  %v113_v27 = vstv %s161_s0 }
  0x37   :  { %v85_v28 = vadd.f32 %v83_v17, %v78_v22  ;;  %v114_v30 = vmul.f32 %v113_v27, %v57_v0  ;;  %v120_v31 = vstv %s162_s19 }
  0x38   :  { %v109_v32 = vrot.slane %v107_v26, 1  ;;  %v121_v33 = vmul.f32 %v120_v31, %v57_v0  ;;  %v127_v36 = vstv %s163_s20 }
  0x39   :  { %v89_v34 = vadd.f32 %v88_v23, %v85_v28  ;;  %v116_v35 = vrot.slane %v114_v30, 2  ;;  %v131_v37 = vstv %s164_s21  ;;  %v128_v43 = vmul.f32 %v127_v36, %v58_v8 }
  0x3a   :  { %v111_v38 = vadd.f32 %v109_v32, %v104_v25  ;;  %v123_v39 = vrot.slane %v121_v33, 3  ;;  %v132_v40 = vmul.f32 %v131_v37, %v58_v8 }
  0x3b   :  { %v96_v41 = vadd.f32 %v94_v29, %v89_v34 }
  0x3c   :  { %v118_v42 = vadd.f32 %v116_v35, %v111_v38  ;;  %v134_v45 = vrot.slane %v132_v40, 1 }
  0x3d   :  { %98 = vst.msk [vmem:[#allocation8] sm:$0x1] %vm97_vm0, %v96_v41 }
  0x3e   :  { %v125_v44 = vadd.f32 %v123_v39, %v118_v42 }
  0x40   :  { %v129_v46 = vadd.f32 %v128_v43, %v125_v44 }
  0x42   :  { %v136_v47 = vadd.f32 %v134_v45, %v129_v46 }
  0x44   :  { %137 = vst.msk [vmem:[#allocation8 + $0x1] sm:$0x1] %vm97_vm0, %v136_v47 }
  0x45   :  { %216 = shalt.err (!%p213_p5)
}
  0x46   :  { %147 = dma.vmem_to_hbm [thread:$0]  %s145_s22, 32, %s291_s5, [#allocation3]  }
  0x47   :  { %229 = dma.done.wait [#allocation3], 32  }
  0x48   :  { %230 = vsyncadd [#allocation3], 4294967264 }
  0x49   :  { %151 = vsyncpa [#allocation3], 1 }
  0x4a   :  { %152 = vsyncpa [#allocation4], 1 }
  0x4b   :  { %153 = vsyncpa [#allocation6], 1 }

</bundles_post_ra>
